<compile_context>
chip_gen: v5e
topology: v5e:2x2
jax: 0.10.0
libtpu: 0.0.40
codegen_flags: <defaults>
</compile_context>

<pallas_src>
import functools

import jax
import jax.numpy as jnp
from jax.experimental import pallas as pl
from jax.experimental.pallas import tpu as pltpu
from jax.scipy.linalg import block_diag


# ---------------------------------------------------------------------------
# Fused Pallas kernel: entire GCN_adaboost forward in one call
# ---------------------------------------------------------------------------

def _fused_kernel(
    xb_ref,      # [4N, 4*nFeat]  bf16  block-diag stacked input
    adj_ref,     # [4N, 4N]       bf16  block-diag adjacency (adj5,adj4,adj3,adj1)
    w1_ref,      # [4*nFeat, 4*nhid2]   bf16 blockdiag(gc1,gc4,gc4,gc10)
    wmid_ref,    # [2, 4*nhid, 4*nhid]  bf16 blockdiag layer-2 / layer-3 weights
    whead_ref,   # [4*nhid4, 4*nclass]  bf16 blockdiag(dense1..dense4)
    wsim_ref,    # [4*nhid4, nclass]    bf16 block-placed simdense weight
    b_ref,       # [3, 4N, 4*nhid]      f32  row-block-structured GCN biases
    bh_ref,      # [1, 5*nclass]        f32  [d1b|d2b|d3b|d4b|simb]
    y_ref,       # [N, nclass]          f32
    sel_ref,     # [N, 1]               f32  row multiplicity of `index`
    out_ref,     # [N, out_width]       f32
    *, n, nclass, out_width,
):
    f32 = jnp.float32
    bf16 = jnp.bfloat16

    def mm(a, b):
        return jnp.dot(a, b, preferred_element_type=f32)

    adj = adj_ref[...]

    # ---- three GCN layers, all four branches fused block-diagonally --------
    # layer:  H <- relu( adj_all @ (H @ W_blockdiag) + B_blockstructured )
    h = mm(adj, mm(xb_ref[...], w1_ref[...]).astype(bf16)) + b_ref[0]
    h = jnp.maximum(h, 0.0)
    h = mm(adj, mm(h.astype(bf16), wmid_ref[0]).astype(bf16)) + b_ref[1]
    h = jnp.maximum(h, 0.0)
    h = mm(adj, mm(h.astype(bf16), wmid_ref[1]).astype(bf16)) + b_ref[2]
    # h: [4N, 4*nhid4] pre-ReLU final GCN states; branch b lives in
    # row-block b / lane-block b, exact zeros everywhere else.

    # ---- all dense heads in one block-diag matmul; simdense in one matmul --
    heads = mm(jnp.maximum(h, 0.0).astype(bf16), whead_ref[...])   # [4N, 4*nclass]
    simp = mm(h.astype(bf16), wsim_ref[...])                       # [4N, nclass]

    bh = bh_ref[...]
    x1_d = heads[0 * n:1 * n, 0 * nclass:1 * nclass] + bh[:, 0 * nclass:1 * nclass]
    x2_d = heads[1 * n:2 * n, 1 * nclass:2 * nclass] + bh[:, 1 * nclass:2 * nclass]
    x3_d = heads[2 * n:3 * n, 2 * nclass:3 * nclass] + bh[:, 2 * nclass:3 * nclass]
    x4_d = heads[3 * n:4 * n, 3 * nclass:4 * nclass] + bh[:, 3 * nclass:4 * nclass]
    # simdense(cat(x2,x3)) = x2 @ simw[:nhid4] + x3 @ simw[nhid4:] + simb,
    # delivered in row-blocks 1 and 2 of `simp`.
    sim_d = simp[1 * n:2 * n, :] + simp[2 * n:3 * n, :] + bh[:, 4 * nclass:5 * nclass]

    # ---- adaboost alpha epilogue (f32, VPU/EUP) -----------------------------
    # Exact reformulation of  sum(masked_select(f(A[index]), g(B[index]) >= 0))
    # as a row-count-weighted masked sum over all rows (handles duplicates).
    y_v = y_ref[...]
    sel = sel_ref[...]

    def alpha_of(score, mask):
        e = jnp.exp(-(score * y_v))
        ew = jnp.where(sel > 0.0, sel * e, 0.0)   # unselected rows contribute exactly 0
        m = mask * y_v
        s_pos = jnp.sum(jnp.where(m >= 0.0, ew, 0.0))
        s_neg = jnp.sum(ew) - s_pos
        return 0.5 * jnp.log(s_pos / s_neg)

    alpha2 = alpha_of(x4_d, sim_d)
    part1 = x4_d + sim_d * alpha2
    alpha3 = alpha_of(part1, x1_d)
    part2 = part1 + x1_d * alpha3

    # ---- single lane-dense output store (padded to out_width lanes) --------
    pad = jnp.zeros((n, out_width - 3 * nclass), f32)
    out_ref[...] = jnp.concatenate([x2_d, x3_d, part2, pad], axis=-1)


# ---------------------------------------------------------------------------
# One-time parameter packing (block-diagonal slabs, bf16 matmul weights)
# ---------------------------------------------------------------------------

def pack_params(params, n_nodes):
    p = params
    bf16 = jnp.bfloat16
    nhid2 = p["gc1_w"].shape[1]
    nhid3 = p["gc2_w"].shape[1]
    nhid4 = p["gc3_w"].shape[1]
    nclass = p["dense1_w"].shape[1]
    assert nhid2 == nhid3 == nhid4, "weight packing assumes equal hidden widths"

    # branch order: (adj5,gc1/2/3,dense1) (adj4,gc4/5/6,dense2)
    #               (adj3,gc4/5/6,dense3) (adj1,gc10/11/12,dense4)
    w1 = block_diag(p["gc1_w"], p["gc4_w"], p["gc4_w"], p["gc10_w"]).astype(bf16)
    w2 = block_diag(p["gc2_w"], p["gc5_w"], p["gc5_w"], p["gc11_w"])
    w3 = block_diag(p["gc3_w"], p["gc6_w"], p["gc6_w"], p["gc12_w"])
    wmid = jnp.stack([w2, w3]).astype(bf16)
    whead = block_diag(p["dense1_w"], p["dense2_w"],
                       p["dense3_w"], p["dense4_w"]).astype(bf16)

    wsim = jnp.zeros((4 * nhid4, nclass), jnp.float32)
    wsim = wsim.at[nhid4:2 * nhid4].set(p["simdense_w"][:nhid4])
    wsim = wsim.at[2 * nhid4:3 * nhid4].set(p["simdense_w"][nhid4:])
    wsim = wsim.astype(bf16)

    def branch_bias(b0, b1, b2, b3):
        bd = block_diag(b0[None, :], b1[None, :], b2[None, :], b3[None, :])  # [4, 4*nhid]
        return jnp.repeat(bd, n_nodes, axis=0)                               # [4N, 4*nhid]

    b_layers = jnp.stack([
        branch_bias(p["gc1_b"], p["gc4_b"], p["gc4_b"], p["gc10_b"]),
        branch_bias(p["gc2_b"], p["gc5_b"], p["gc5_b"], p["gc11_b"]),
        branch_bias(p["gc3_b"], p["gc6_b"], p["gc6_b"], p["gc12_b"]),
    ]).astype(jnp.float32)

    b_head = jnp.concatenate([p["dense1_b"], p["dense2_b"], p["dense3_b"],
                              p["dense4_b"], p["simdense_b"]])[None, :].astype(jnp.float32)

    return {"w1": w1, "wmid": wmid, "whead": whead, "wsim": wsim,
            "b_layers": b_layers, "b_head": b_head}


# ---------------------------------------------------------------------------
# Wrapper
# ---------------------------------------------------------------------------

def gcn_adaboost_forward(packed, x, adj1, adj2, adj3, adj4, adj5, y, index):
    del adj2  # unused in the active forward path (as in the reference module)
    bf16 = jnp.bfloat16
    n = x.shape[0]
    nclass = packed["b_head"].shape[1] // 5
    out_width = 128
    assert 3 * nclass <= out_width

    # row multiplicity of `index` (exact, handles duplicates) — one XLA scatter.
    sel = jnp.zeros((n, 1), jnp.float32).at[index].add(1.0)

    # block-diagonal stacking of all four branches (cheap XLA ops, tiny arrays)
    xb = block_diag(x, x, x, x).astype(bf16)                    # [4N, 4*nFeat]
    adj_all = block_diag(adj5, adj4, adj3, adj1).astype(bf16)   # [4N, 4N]

    operands = [
        xb, adj_all,
        packed["w1"], packed["wmid"], packed["whead"], packed["wsim"],
        packed["b_layers"], packed["b_head"],
        y.astype(jnp.float32), sel,
    ]

    b4 = xb.shape[0]
    w1c = packed["w1"].shape[1]
    flops = 2 * (b4 * xb.shape[1] * w1c
                 + 3 * b4 * b4 * w1c
                 + 2 * b4 * packed["wmid"].shape[1] * packed["wmid"].shape[2]
                 + b4 * packed["whead"].shape[0] * packed["whead"].shape[1]
                 + b4 * packed["wsim"].shape[0] * packed["wsim"].shape[1])
    bytes_accessed = (sum(int(o.size) * o.dtype.itemsize for o in operands)
                      + n * out_width * 4)

    vmem = pl.BlockSpec(memory_space=pltpu.MemorySpace.VMEM)
    kernel = functools.partial(_fused_kernel, n=n, nclass=nclass, out_width=out_width)

    slab = pl.pallas_call(
        kernel,
        out_shape=jax.ShapeDtypeStruct((n, out_width), jnp.float32),
        in_specs=[vmem] * len(operands),
        out_specs=vmem,
        cost_estimate=pl.CostEstimate(flops=flops,
                                      transcendentals=2 * n * nclass + 2,
                                      bytes_accessed=bytes_accessed),
    )(*operands)

    x2_dense = slab[:, 0:nclass]
    x3_dense = slab[:, nclass:2 * nclass]
    part2_dense = slab[:, 2 * nclass:3 * nclass]
    return x2_dense, x3_dense, part2_dense


# ---------------------------------------------------------------------------
# Parameter construction (deterministic, synthetic)
# ---------------------------------------------------------------------------

def init_params(key, nFeat, nhid2, nhid3, nhid4, nclass):
    params = {}
    specs = {
        "gc1": (nFeat, nhid2), "gc2": (nhid2, nhid3), "gc3": (nhid3, nhid4),
        "gc4": (nFeat, nhid2), "gc5": (nhid2, nhid3), "gc6": (nhid3, nhid4),
        "gc10": (nFeat, nhid2), "gc11": (nhid2, nhid3), "gc12": (nhid3, nhid4),
        "dense1": (nhid4, nclass), "dense2": (nhid4, nclass),
        "dense3": (nhid4, nclass), "dense4": (nhid4, nclass),
        "simdense": (2 * nhid4, nclass),
        # declared in __init__ but unused in the active forward path:
        "linear1": (nhid4, 15), "linear2": (nhid4, 5), "linear3": (nhid4, 15),
        "aggre1": (nhid2, nclass), "aggre": (nhid3, nclass),
    }
    for name, (fin, fout) in specs.items():
        key, kw, kb = jax.random.split(key, 3)
        params[name + "_w"] = (0.1 * jax.random.normal(kw, (fin, fout))).astype(jnp.float32)
        params[name + "_b"] = (0.1 * jax.random.normal(kb, (fout,))).astype(jnp.float32)
    return params


# ---------------------------------------------------------------------------
# Pure-JAX reference (un-fused, literal transcription of the PyTorch path)
# ---------------------------------------------------------------------------

def reference_forward(params, x, adj1, adj3, adj4, adj5, y, index):
    p = params

    def gcn(adj, h, w, b, relu):
        o = adj @ (h @ w) + b
        return jnp.maximum(o, 0.0) if relu else o

    def dense(h, w, b):
        return h @ w + b

    x1 = gcn(adj5, x, p["gc1_w"], p["gc1_b"], True)
    x1 = gcn(adj5, x1, p["gc2_w"], p["gc2_b"], True)
    x1 = gcn(adj5, x1, p["gc3_w"], p["gc3_b"], False)
    x1_d = dense(jnp.maximum(x1, 0.0), p["dense1_w"], p["dense1_b"])

    x2 = gcn(adj4, x, p["gc4_w"], p["gc4_b"], True)
    x2 = gcn(adj4, x2, p["gc5_w"], p["gc5_b"], True)
    x2 = gcn(adj4, x2, p["gc6_w"], p["gc6_b"], False)
    x2_d = dense(jnp.maximum(x2, 0.0), p["dense2_w"], p["dense2_b"])

    x3 = gcn(adj3, x, p["gc4_w"], p["gc4_b"], True)
    x3 = gcn(adj3, x3, p["gc5_w"], p["gc5_b"], True)
    x3 = gcn(adj3, x3, p["gc6_w"], p["gc6_b"], False)
    x3_d = dense(jnp.maximum(x3, 0.0), p["dense3_w"], p["dense3_b"])

    sim_d = dense(jnp.concatenate([x2, x3], axis=1),
                  p["simdense_w"], p["simdense_b"])

    x4 = gcn(adj1, x, p["gc10_w"], p["gc10_b"], True)
    x4 = gcn(adj1, x4, p["gc11_w"], p["gc11_b"], True)
    x4 = gcn(adj1, x4, p["gc12_w"], p["gc12_b"], False)
    x4_d = dense(jnp.maximum(x4, 0.0), p["dense4_w"], p["dense4_b"])

    y_sel = y[index]
    t3 = jnp.exp(-(x4_d[index] * y_sel))
    t4 = sim_d[index] * y_sel
    s3 = jnp.sum(jnp.where(t4 >= 0, t3, 0.0))
    s4 = jnp.sum(t3) - s3
    a2 = 0.5 * jnp.log(s3 / s4)
    part1 = x4_d + sim_d * a2

    t5 = jnp.exp(-(part1[index] * y_sel))
    t6 = x1_d[index] * y_sel
    s5 = jnp.sum(jnp.where(t6 >= 0, t5, 0.0))
    s6 = jnp.sum(t5) - s5
    a3 = 0.5 * jnp.log(s5 / s6)
    part2 = part1 + x1_d * a3
    return x2_d, x3_d, part2


# ---------------------------------------------------------------------------
# Main
# ---------------------------------------------------------------------------

if __name__ == "__main__":
    # small shapes consistent with the module's forward
    N = 8          # number of graph nodes
    nFeat = 16
    nhid1 = 32     # declared by the module but unused
    nhid2 = 32
    nhid3 = 32
    nhid4 = 32
    nclass = 4

    key = jax.random.PRNGKey(0)
    key, kp, kx, ka1, ka3, ka4, ka5, ky = jax.random.split(key, 8)

    params = init_params(kp, nFeat, nhid2, nhid3, nhid4, nclass)
    packed = pack_params(params, N)   # packed once, outside the jitted forward

    x = jax.random.normal(kx, (N, nFeat), dtype=jnp.float32)

    def make_adj(k):
        a = jax.random.uniform(k, (N, N), dtype=jnp.float32)
        a = a + jnp.eye(N, dtype=jnp.float32)
        return a / jnp.sum(a, axis=1, keepdims=True)   # row-normalized

    adj1 = make_adj(ka1)
    adj2 = jnp.zeros((N, N), dtype=jnp.float32)  # unused by forward (as in module)
    adj3 = make_adj(ka3)
    adj4 = make_adj(ka4)
    adj5 = make_adj(ka5)

    # labels in {-1, +1}
    y = jnp.where(jax.random.bernoulli(ky, 0.5, (N, nclass)), 1.0, -1.0).astype(jnp.float32)
    index = jnp.array([0, 2, 4, 6], dtype=jnp.int32)

    fwd = jax.jit(gcn_adaboost_forward)
    x2_dense, x3_dense, part2_dense = fwd(packed, x, adj1, adj2, adj3, adj4, adj5, y, index)
    jax.block_until_ready((x2_dense, x3_dense, part2_dense))

    assert x2_dense.shape == (N, nclass)
    assert x3_dense.shape == (N, nclass)
    assert part2_dense.shape == (N, nclass)

    # correctness vs. a literal pure-JAX f32 transcription.  The kernel runs
    # the matmuls in bf16 (native MXU dtype), so x2/x3 get a bf16-level
    # tolerance; part2 goes through two log-ratio adaboost steps that amplify
    # rounding near the mask threshold, so it gets a slightly looser one.
    ref = reference_forward(params, x, adj1, adj3, adj4, adj5, y, index)
    assert jnp.allclose(x2_dense, ref[0], rtol=5e-2, atol=5e-2), "x2_dense mismatch"
    assert jnp.allclose(x3_dense, ref[1], rtol=5e-2, atol=5e-2), "x3_dense mismatch"
    assert jnp.allclose(part2_dense, ref[2], rtol=1e-1, atol=1e-1), "part2_dense mismatch"

    print("KERNEL_OK")
</pallas_src>

<mosaic_0001>
module attributes {stable_mosaic.version = 11 : i64} {
  func.func @_fused_kernel(%arg0: memref<32x64xbf16, #tpu.memory_space<vmem>>, %arg1: memref<32x32xbf16, #tpu.memory_space<vmem>>, %arg2: memref<64x128xbf16, #tpu.memory_space<vmem>>, %arg3: memref<2x128x128xbf16, #tpu.memory_space<vmem>>, %arg4: memref<128x16xbf16, #tpu.memory_space<vmem>>, %arg5: memref<128x4xbf16, #tpu.memory_space<vmem>>, %arg6: memref<3x32x128xf32, #tpu.memory_space<vmem>>, %arg7: memref<1x20xf32, #tpu.memory_space<vmem>>, %arg8: memref<8x4xf32, #tpu.memory_space<vmem>>, %arg9: memref<8x1xf32, #tpu.memory_space<vmem>>, %arg10: memref<8x128xf32, #tpu.memory_space<vmem>>) attributes {dimension_semantics = [], scalar_prefetch = 0 : i64, scratch_operands = 0 : i64, tpu.core_type = #tpu.core_type<tc>} {
    %c0 = arith.constant 0 : index
    %c0_0 = arith.constant 0 : index
    %0 = vector.load %arg1[%c0, %c0_0] : memref<32x32xbf16, #tpu.memory_space<vmem>>, vector<32x32xbf16>
    %c0_1 = arith.constant 0 : index
    %c0_2 = arith.constant 0 : index
    %1 = vector.load %arg0[%c0_1, %c0_2] : memref<32x64xbf16, #tpu.memory_space<vmem>>, vector<32x64xbf16>
    %c0_3 = arith.constant 0 : index
    %c0_4 = arith.constant 0 : index
    %2 = vector.load %arg2[%c0_3, %c0_4] : memref<64x128xbf16, #tpu.memory_space<vmem>>, vector<64x128xbf16>
    %cst = arith.constant dense<0.000000e+00> : vector<32x128xf32>
    %3 = tpu.matmul %1, %2, %cst {dimension_numbers = #tpu.dot_dimension_numbers<[1], [0], [0], [1], [0, 0, 1, 1], [], []>} : vector<32x64xbf16>, vector<64x128xbf16>, vector<32x128xf32> -> vector<32x128xf32>
    %4 = arith.truncf %3 : vector<32x128xf32> to vector<32x128xbf16>
    %cst_5 = arith.constant dense<0.000000e+00> : vector<32x128xf32>
    %5 = tpu.matmul %0, %4, %cst_5 {dimension_numbers = #tpu.dot_dimension_numbers<[1], [0], [0], [1], [0, 0, 1, 1], [], []>} : vector<32x32xbf16>, vector<32x128xbf16>, vector<32x128xf32> -> vector<32x128xf32>
    %c0_6 = arith.constant 0 : index
    %c0_7 = arith.constant 0 : index
    %c0_8 = arith.constant 0 : index
    %6 = vector.load %arg6[%c0_6, %c0_7, %c0_8] : memref<3x32x128xf32, #tpu.memory_space<vmem>>, vector<1x32x128xf32>
    %7 = vector.shape_cast %6 : vector<1x32x128xf32> to vector<32x128xf32>
    %8 = arith.addf %5, %7 : vector<32x128xf32>
    %cst_9 = arith.constant 0.000000e+00 : f32
    %9 = vector.broadcast %cst_9 : f32 to vector<32x128xf32>
    %10 = arith.maximumf %8, %9 : vector<32x128xf32>
    %11 = arith.truncf %10 : vector<32x128xf32> to vector<32x128xbf16>
    %c0_10 = arith.constant 0 : index
    %c0_11 = arith.constant 0 : index
    %c0_12 = arith.constant 0 : index
    %12 = vector.load %arg3[%c0_10, %c0_11, %c0_12] : memref<2x128x128xbf16, #tpu.memory_space<vmem>>, vector<1x128x128xbf16>
    %13 = vector.shape_cast %12 : vector<1x128x128xbf16> to vector<128x128xbf16>
    %cst_13 = arith.constant dense<0.000000e+00> : vector<32x128xf32>
    %14 = tpu.matmul %11, %13, %cst_13 {dimension_numbers = #tpu.dot_dimension_numbers<[1], [0], [0], [1], [0, 0, 1, 1], [], []>} : vector<32x128xbf16>, vector<128x128xbf16>, vector<32x128xf32> -> vector<32x128xf32>
    %15 = arith.truncf %14 : vector<32x128xf32> to vector<32x128xbf16>
    %cst_14 = arith.constant dense<0.000000e+00> : vector<32x128xf32>
    %16 = tpu.matmul %0, %15, %cst_14 {dimension_numbers = #tpu.dot_dimension_numbers<[1], [0], [0], [1], [0, 0, 1, 1], [], []>} : vector<32x32xbf16>, vector<32x128xbf16>, vector<32x128xf32> -> vector<32x128xf32>
    %c1 = arith.constant 1 : index
    %c0_15 = arith.constant 0 : index
    %c0_16 = arith.constant 0 : index
    %17 = vector.load %arg6[%c1, %c0_15, %c0_16] : memref<3x32x128xf32, #tpu.memory_space<vmem>>, vector<1x32x128xf32>
    %18 = vector.shape_cast %17 : vector<1x32x128xf32> to vector<32x128xf32>
    %19 = arith.addf %16, %18 : vector<32x128xf32>
    %cst_17 = arith.constant 0.000000e+00 : f32
    %20 = vector.broadcast %cst_17 : f32 to vector<32x128xf32>
    %21 = arith.maximumf %19, %20 : vector<32x128xf32>
    %22 = arith.truncf %21 : vector<32x128xf32> to vector<32x128xbf16>
    %c1_18 = arith.constant 1 : index
    %c0_19 = arith.constant 0 : index
    %c0_20 = arith.constant 0 : index
    %23 = vector.load %arg3[%c1_18, %c0_19, %c0_20] : memref<2x128x128xbf16, #tpu.memory_space<vmem>>, vector<1x128x128xbf16>
    %24 = vector.shape_cast %23 : vector<1x128x128xbf16> to vector<128x128xbf16>
    %cst_21 = arith.constant dense<0.000000e+00> : vector<32x128xf32>
    %25 = tpu.matmul %22, %24, %cst_21 {dimension_numbers = #tpu.dot_dimension_numbers<[1], [0], [0], [1], [0, 0, 1, 1], [], []>} : vector<32x128xbf16>, vector<128x128xbf16>, vector<32x128xf32> -> vector<32x128xf32>
    %26 = arith.truncf %25 : vector<32x128xf32> to vector<32x128xbf16>
    %cst_22 = arith.constant dense<0.000000e+00> : vector<32x128xf32>
    %27 = tpu.matmul %0, %26, %cst_22 {dimension_numbers = #tpu.dot_dimension_numbers<[1], [0], [0], [1], [0, 0, 1, 1], [], []>} : vector<32x32xbf16>, vector<32x128xbf16>, vector<32x128xf32> -> vector<32x128xf32>
    %c2 = arith.constant 2 : index
    %c0_23 = arith.constant 0 : index
    %c0_24 = arith.constant 0 : index
    %28 = vector.load %arg6[%c2, %c0_23, %c0_24] : memref<3x32x128xf32, #tpu.memory_space<vmem>>, vector<1x32x128xf32>
    %29 = vector.shape_cast %28 : vector<1x32x128xf32> to vector<32x128xf32>
    %30 = arith.addf %27, %29 : vector<32x128xf32>
    %cst_25 = arith.constant 0.000000e+00 : f32
    %31 = vector.broadcast %cst_25 : f32 to vector<32x128xf32>
    %32 = arith.maximumf %30, %31 : vector<32x128xf32>
    %33 = arith.truncf %32 : vector<32x128xf32> to vector<32x128xbf16>
    %c0_26 = arith.constant 0 : index
    %c0_27 = arith.constant 0 : index
    %34 = vector.load %arg4[%c0_26, %c0_27] : memref<128x16xbf16, #tpu.memory_space<vmem>>, vector<128x16xbf16>
    %cst_28 = arith.constant dense<0.000000e+00> : vector<32x16xf32>
    %35 = tpu.matmul %33, %34, %cst_28 {dimension_numbers = #tpu.dot_dimension_numbers<[1], [0], [0], [1], [0, 0, 1, 1], [], []>} : vector<32x128xbf16>, vector<128x16xbf16>, vector<32x16xf32> -> vector<32x16xf32>
    %36 = arith.truncf %30 : vector<32x128xf32> to vector<32x128xbf16>
    %c0_29 = arith.constant 0 : index
    %c0_30 = arith.constant 0 : index
    %37 = vector.load %arg5[%c0_29, %c0_30] : memref<128x4xbf16, #tpu.memory_space<vmem>>, vector<128x4xbf16>
    %cst_31 = arith.constant dense<0.000000e+00> : vector<32x4xf32>
    %38 = tpu.matmul %36, %37, %cst_31 {dimension_numbers = #tpu.dot_dimension_numbers<[1], [0], [0], [1], [0, 0, 1, 1], [], []>} : vector<32x128xbf16>, vector<128x4xbf16>, vector<32x4xf32> -> vector<32x4xf32>
    %c0_32 = arith.constant 0 : index
    %c0_33 = arith.constant 0 : index
    %39 = vector.load %arg7[%c0_32, %c0_33] : memref<1x20xf32, #tpu.memory_space<vmem>>, vector<1x20xf32>
    %40 = vector.extract_strided_slice %35 {offsets = [0, 0], sizes = [8, 4], strides = [1, 1]} : vector<32x16xf32> to vector<8x4xf32>
    %41 = vector.extract_strided_slice %39 {offsets = [0, 0], sizes = [1, 4], strides = [1, 1]} : vector<1x20xf32> to vector<1x4xf32>
    %42 = vector.broadcast %41 : vector<1x4xf32> to vector<8x4xf32>
    %43 = arith.addf %40, %42 : vector<8x4xf32>
    %44 = vector.extract_strided_slice %35 {offsets = [8, 4], sizes = [8, 4], strides = [1, 1]} : vector<32x16xf32> to vector<8x4xf32>
    %45 = vector.extract_strided_slice %39 {offsets = [0, 4], sizes = [1, 4], strides = [1, 1]} : vector<1x20xf32> to vector<1x4xf32>
    %46 = vector.broadcast %45 : vector<1x4xf32> to vector<8x4xf32>
    %47 = arith.addf %44, %46 : vector<8x4xf32>
    %48 = vector.extract_strided_slice %35 {offsets = [16, 8], sizes = [8, 4], strides = [1, 1]} : vector<32x16xf32> to vector<8x4xf32>
    %49 = vector.extract_strided_slice %39 {offsets = [0, 8], sizes = [1, 4], strides = [1, 1]} : vector<1x20xf32> to vector<1x4xf32>
    %50 = vector.broadcast %49 : vector<1x4xf32> to vector<8x4xf32>
    %51 = arith.addf %48, %50 : vector<8x4xf32>
    %52 = vector.extract_strided_slice %35 {offsets = [24, 12], sizes = [8, 4], strides = [1, 1]} : vector<32x16xf32> to vector<8x4xf32>
    %53 = vector.extract_strided_slice %39 {offsets = [0, 12], sizes = [1, 4], strides = [1, 1]} : vector<1x20xf32> to vector<1x4xf32>
    %54 = vector.broadcast %53 : vector<1x4xf32> to vector<8x4xf32>
    %55 = arith.addf %52, %54 : vector<8x4xf32>
    %56 = vector.extract_strided_slice %38 {offsets = [8, 0], sizes = [8, 4], strides = [1, 1]} : vector<32x4xf32> to vector<8x4xf32>
    %57 = vector.extract_strided_slice %38 {offsets = [16, 0], sizes = [8, 4], strides = [1, 1]} : vector<32x4xf32> to vector<8x4xf32>
    %58 = arith.addf %56, %57 : vector<8x4xf32>
    %59 = vector.extract_strided_slice %39 {offsets = [0, 16], sizes = [1, 4], strides = [1, 1]} : vector<1x20xf32> to vector<1x4xf32>
    %60 = vector.broadcast %59 : vector<1x4xf32> to vector<8x4xf32>
    %61 = arith.addf %58, %60 : vector<8x4xf32>
    %c0_34 = arith.constant 0 : index
    %c0_35 = arith.constant 0 : index
    %62 = vector.load %arg8[%c0_34, %c0_35] : memref<8x4xf32, #tpu.memory_space<vmem>>, vector<8x4xf32>
    %c0_36 = arith.constant 0 : index
    %c0_37 = arith.constant 0 : index
    %63 = vector.load %arg9[%c0_36, %c0_37] : memref<8x1xf32, #tpu.memory_space<vmem>>, vector<8x1xf32>
    %64 = arith.mulf %55, %62 : vector<8x4xf32>
    %cst_38 = arith.constant 0.000000e+00 : f32
    %65 = vector.broadcast %cst_38 : f32 to vector<8x4xf32>
    %66 = arith.subf %65, %64 : vector<8x4xf32>
    %67 = math.exp %66 : vector<8x4xf32>
    %cst_39 = arith.constant 0.000000e+00 : f32
    %68 = vector.broadcast %cst_39 : f32 to vector<8x1xf32>
    %69 = arith.cmpf ogt, %63, %68 : vector<8x1xf32>
    %70 = vector.broadcast %63 : vector<8x1xf32> to vector<8x4xf32>
    %71 = arith.mulf %70, %67 : vector<8x4xf32>
    %cst_40 = arith.constant 0.000000e+00 : f32
    %72 = vector.shape_cast %69 : vector<8x1xi1> to vector<8x1xi1>
    %73 = vector.broadcast %72 : vector<8x1xi1> to vector<8x4xi1>
    %74 = vector.broadcast %cst_40 : f32 to vector<8x4xf32>
    %75 = arith.select %73, %71, %74 : vector<8x4xi1>, vector<8x4xf32>
    %76 = arith.mulf %61, %62 : vector<8x4xf32>
    %cst_41 = arith.constant 0.000000e+00 : f32
    %77 = vector.broadcast %cst_41 : f32 to vector<8x4xf32>
    %78 = arith.cmpf oge, %76, %77 : vector<8x4xf32>
    %cst_42 = arith.constant 0.000000e+00 : f32
    %79 = vector.broadcast %cst_42 : f32 to vector<8x4xf32>
    %80 = arith.select %78, %75, %79 : vector<8x4xi1>, vector<8x4xf32>
    %81 = vector.shape_cast %80 : vector<8x4xf32> to vector<1x8x4xf32>
    %cst_43 = arith.constant dense<0.000000e+00> : vector<1xf32>
    %82 = vector.multi_reduction <add>, %81, %cst_43 [1, 2] : vector<1x8x4xf32> to vector<1xf32>
    %83 = vector.shape_cast %82 : vector<1xf32> to vector<1x1x1xf32>
    %84 = vector.extract %83[0, 0, 0] : f32 from vector<1x1x1xf32>
    %85 = vector.shape_cast %75 : vector<8x4xf32> to vector<1x8x4xf32>
    %cst_44 = arith.constant dense<0.000000e+00> : vector<1xf32>
    %86 = vector.multi_reduction <add>, %85, %cst_44 [1, 2] : vector<1x8x4xf32> to vector<1xf32>
    %87 = vector.shape_cast %86 : vector<1xf32> to vector<1x1x1xf32>
    %88 = vector.extract %87[0, 0, 0] : f32 from vector<1x1x1xf32>
    %89 = arith.subf %88, %84 : f32
    %90 = arith.divf %84, %89 : f32
    %91 = math.log %90 : f32
    %cst_45 = arith.constant 5.000000e-01 : f32
    %92 = arith.mulf %cst_45, %91 : f32
    %93 = vector.broadcast %92 : f32 to vector<8x4xf32>
    %94 = arith.mulf %61, %93 : vector<8x4xf32>
    %95 = arith.addf %55, %94 : vector<8x4xf32>
    %96 = arith.mulf %95, %62 : vector<8x4xf32>
    %cst_46 = arith.constant 0.000000e+00 : f32
    %97 = vector.broadcast %cst_46 : f32 to vector<8x4xf32>
    %98 = arith.subf %97, %96 : vector<8x4xf32>
    %99 = math.exp %98 : vector<8x4xf32>
    %cst_47 = arith.constant 0.000000e+00 : f32
    %100 = vector.broadcast %cst_47 : f32 to vector<8x1xf32>
    %101 = arith.cmpf ogt, %63, %100 : vector<8x1xf32>
    %102 = vector.broadcast %63 : vector<8x1xf32> to vector<8x4xf32>
    %103 = arith.mulf %102, %99 : vector<8x4xf32>
    %cst_48 = arith.constant 0.000000e+00 : f32
    %104 = vector.shape_cast %101 : vector<8x1xi1> to vector<8x1xi1>
    %105 = vector.broadcast %104 : vector<8x1xi1> to vector<8x4xi1>
    %106 = vector.broadcast %cst_48 : f32 to vector<8x4xf32>
    %107 = arith.select %105, %103, %106 : vector<8x4xi1>, vector<8x4xf32>
    %108 = arith.mulf %43, %62 : vector<8x4xf32>
    %cst_49 = arith.constant 0.000000e+00 : f32
    %109 = vector.broadcast %cst_49 : f32 to vector<8x4xf32>
    %110 = arith.cmpf oge, %108, %109 : vector<8x4xf32>
    %cst_50 = arith.constant 0.000000e+00 : f32
    %111 = vector.broadcast %cst_50 : f32 to vector<8x4xf32>
    %112 = arith.select %110, %107, %111 : vector<8x4xi1>, vector<8x4xf32>
    %113 = vector.shape_cast %112 : vector<8x4xf32> to vector<1x8x4xf32>
    %cst_51 = arith.constant dense<0.000000e+00> : vector<1xf32>
    %114 = vector.multi_reduction <add>, %113, %cst_51 [1, 2] : vector<1x8x4xf32> to vector<1xf32>
    %115 = vector.shape_cast %114 : vector<1xf32> to vector<1x1x1xf32>
    %116 = vector.extract %115[0, 0, 0] : f32 from vector<1x1x1xf32>
    %117 = vector.shape_cast %107 : vector<8x4xf32> to vector<1x8x4xf32>
    %cst_52 = arith.constant dense<0.000000e+00> : vector<1xf32>
    %118 = vector.multi_reduction <add>, %117, %cst_52 [1, 2] : vector<1x8x4xf32> to vector<1xf32>
    %119 = vector.shape_cast %118 : vector<1xf32> to vector<1x1x1xf32>
    %120 = vector.extract %119[0, 0, 0] : f32 from vector<1x1x1xf32>
    %121 = arith.subf %120, %116 : f32
    %122 = arith.divf %116, %121 : f32
    %123 = math.log %122 : f32
    %cst_53 = arith.constant 5.000000e-01 : f32
    %124 = arith.mulf %cst_53, %123 : f32
    %125 = vector.broadcast %124 : f32 to vector<8x4xf32>
    %126 = arith.mulf %43, %125 : vector<8x4xf32>
    %127 = arith.addf %95, %126 : vector<8x4xf32>
    %cst_54 = arith.constant 0.000000e+00 : f32
    %128 = vector.broadcast %cst_54 : f32 to vector<8x116xf32>
    %129 = tpu.concatenate %47, %51, %127, %128 in 1 : vector<8x4xf32>, vector<8x4xf32>, vector<8x4xf32>, vector<8x116xf32> -> vector<8x128xf32>
    %c0_55 = arith.constant 0 : index
    %c0_56 = arith.constant 0 : index
    %130 = vector.load %arg10[%c0_55, %c0_56] : memref<8x128xf32, #tpu.memory_space<vmem>>, vector<8x128xf32>
    tpu.vector_store %arg10[%c0_55, %c0_56], %129 {strides = array<i32>} : memref<8x128xf32, #tpu.memory_space<vmem>>, vector<8x128xf32>,
    return
  }
}

</mosaic_0001>

<bundles_post_ra>
// kernel: gcn_adaboost_forward.1
= control target key start
LH: loop header
LB: loop body
LE: loop exit
PB: predicated region body
PF: predicated region fallthrough
CT: control target
= control target key end

     0   :  { %15 = vsyncpa [#allocation3], 0  ;;  %s1054_s16 = smov [#allocation2]   ;;  %s1353_s0 = inlined_call_operand.vmem [shape: bf16[32,64], index: 0, kind: input, shape index: {}]   ;;  %s1354_s1 = inlined_call_operand.vmem [shape: bf16[32,32], index: 1, kind: input, shape index: {}]   ;;  %s1355_s2 = inlined_call_operand.vmem [shape: bf16[64,128], index: 2, kind: input, shape index: {}]   ;;  %s1356_s3 = inlined_call_operand.vmem [shape: bf16[2,128,128], index: 3, kind: input, shape index: {}]   ;;  %s1357_s4 = inlined_call_operand.vmem [shape: bf16[128,16], index: 4, kind: input, shape index: {}]   ;;  %s1358_s5 = inlined_call_operand.vmem [shape: bf16[128,4], index: 5, kind: input, shape index: {}]   ;;  %s1359_s6 = inlined_call_operand.vmem [shape: f32[3,32,128], index: 6, kind: input, shape index: {}]   ;;  %s1360_s7 = inlined_call_operand.hbm [shape: f32[1,20], index: 7, kind: input, shape index: {}]   ;;  %s1361_s8 = inlined_call_operand.vmem [shape: f32[8,4], index: 8, kind: input, shape index: {}]   ;;  %s1362_s9 = inlined_call_operand.vmem [shape: f32[8,1], index: 9, kind: input, shape index: {}]   ;;  %s1363_s10 = inlined_call_operand.vmem [shape: f32[8,128], index: 10, kind: output, shape index: {}]  }
   0x1   :  { %s35_s15 = sshll.u32 %s1360_s7, 4  ;;  %s37_s17 = sshll.u32 %s1054_s16, 4  ;;  %s36_s15 = int_to_ptr.hbm [resolvable:$true] %s35_s15  ;;  %s38_s17 = int_to_ptr.vmem [resolvable:$true] %s37_s17 }
   0x2   :  { %40 = dma.hbm_to_vmem [thread:$0]  %s36_s15, 16, %s38_s17, [#allocation3]  }
   0x3   :  { %1052 = dma.done.wait [#allocation3], 16  }
   0x4   :  { %1053 = vsyncadd [#allocation3], 4294967280  ;;  %v950_v0 = vld [vmem:[%s1355_s2 + $0x18] sm:$0xff]  ;;  %v949_v1 = vld [vmem:[%s1355_s2 + $0x10] sm:$0xff]  ;;  %vm100_vm0 = vcmask 523264   ;;  %vm142_vm1 = vcmask 261120  }
   0x5   :  { %111 = vmatpush.bf16.msra.mxu0 %v950_v0  ;;  %v948_v2 = vld [vmem:[%s1355_s2 + $0x8] sm:$0xff]  ;;  %v947_v3 = vld [vmem:[%s1355_s2] sm:$0xff]  ;;  %v958_v9 = vld [vmem:[%s1356_s3 + $0x38] sm:$0xff]  ;;  %vm614_vm4 = vcmask 31744   ;;  %s1059_s25 = smov 124   ;;  %vm741_vm15 = vcmask 64512  }
   0x6   :  { %v945_v4 = vld [vmem:[%s1353_s0] sm:$0xff]  ;;  %v946_v5 = vld [vmem:[%s1353_s0 + $0x8] sm:$0xff]  ;;  %238 = vmatpush.bf16.msra.mxu2 %v958_v9  ;;  %v957_v10 = vld [vmem:[%s1356_s3 + $0x30] sm:$0xff] }
   0x7   :  { %v956_v12 = vld [vmem:[%s1356_s3 + $0x28] sm:$0xff]  ;;  %v955_v14 = vld [vmem:[%s1356_s3 + $0x20] sm:$0xff]  ;;  %v954_v18 = vld [vmem:[%s1356_s3 + $0x18] sm:$0xff] }
   0x8   :  { %v1151_v16 = vld [vmem:[%s1354_s1] sm:$0xff]  ;;  %v1158_v17 = vld [vmem:[%s1354_s1 + $0x8] sm:$0xff]  ;;  %v953_v19 = vld [vmem:[%s1356_s3 + $0x10] sm:$0xff] }
   0x9   :  { %112 = vmatpush.bf16.msra.mxu0 %v949_v1  ;;  %v952_v20 = vld [vmem:[%s1356_s3 + $0x8] sm:$0xff]  ;;  %v951_v21 = vld [vmem:[%s1356_s3] sm:$0xff]  ;;  %v130_v32 = vld [vmem:[%s1359_s6 + $0x10] sm:$0xff] }
   0xa   :  { %239 = vmatpush.bf16.msra.mxu2 %v957_v10  ;;  %v128_v23 = vld [vmem:[%s1359_s6] sm:$0xff]  ;;  %v129_v24 = vld [vmem:[%s1359_s6 + $0x8] sm:$0xff]  ;;  %v131_v33 = vld [vmem:[%s1359_s6 + $0x18] sm:$0xff] }
   0xb   :  { %v966_v43 = vld [vmem:[%s1356_s3 + $0x78] sm:$0xff]  ;;  %v965_v44 = vld [vmem:[%s1356_s3 + $0x70] sm:$0xff]  ;;  %v964_v46 = vld [vmem:[%s1356_s3 + $0x68] sm:$0xff] }
   0xc   :  { %v963_v48 = vld [vmem:[%s1356_s3 + $0x60] sm:$0xff]  ;;  %v962_v50 = vld [vmem:[%s1356_s3 + $0x58] sm:$0xff]  ;;  %v961_v51 = vld [vmem:[%s1356_s3 + $0x50] sm:$0xff] }
   0xd   :  { %113 = vmatpush.bf16.msra.mxu0 %v948_v2  ;;  %v960_v52 = vld [vmem:[%s1356_s3 + $0x48] sm:$0xff]  ;;  %v959_v53 = vld [vmem:[%s1356_s3 + $0x40] sm:$0xff]  ;;  %v821_v0 = vld [vmem:[%s1359_s6 + $0x30] sm:$0xff] }
   0xe   :  { %240 = vmatpush.bf16.msra.mxu2 %v956_v12  ;;  %v819_v55 = vld [vmem:[%s1359_s6 + $0x20] sm:$0xff]  ;;  %v820_v56 = vld [vmem:[%s1359_s6 + $0x28] sm:$0xff]  ;;  %v822_v1 = vld [vmem:[%s1359_s6 + $0x38] sm:$0xff] }
   0xf   :  { %v982_v12 = vld [vmem:[%s1358_s5 + $0x38] sm:$0xff] }
  0x11   :  { %114 = vmatpush.bf16.msra.mxu0 %v947_v3 }
  0x12   :  { %241 = vmatpush.bf16.msra.mxu2 %v955_v14  ;;  %v981_v14 = vld [vmem:[%s1358_s5 + $0x30] sm:$0xff] }
  0x14   :  { %775 = vmatmul.msk.bf16.vlgmr.msra.gmra.mxu0 %vm100_vm0, %v945_v4 }
  0x16   :  { %242 = vmatpush.bf16.msra.mxu2 %v954_v18  ;;  %v972_v18 = vld [vmem:[%s1357_s4 + $0x28] sm:$0xff] }
  0x1a   :  { %243 = vmatpush.bf16.msra.mxu2 %v953_v19  ;;  %v980_v19 = vld [vmem:[%s1358_s5 + $0x28] sm:$0xff] }
  0x1e   :  { %244 = vmatpush.bf16.msra.mxu2 %v952_v20 }
  0x22   :  { %245 = vmatpush.bf16.msra.mxu2 %v951_v21  ;;  %v971_v21 = vld [vmem:[%s1357_s4 + $0x20] sm:$0xff] }
  0x24   :  { %776 = vmatmul.msk.bf16.gmra.mxu0 %vm100_vm0, %v946_v5  ;;  %vm743_vm0 = vcmask 97280  }
  0x26   :  { %983 = vmatpush.bf16.msrb.mxu2 %v982_v12 }
  0x2a   :  { %984 = vmatpush.bf16.msrb.mxu2 %v981_v14 }
  0x2e   :  { %985 = vmatpush.bf16.msrb.mxu2 %v980_v19 }
  0x91   :  { %v116_v6 = vpop.f32.mrf.mxu0 }
  0x99   :  { %v118_v7 = vpop.f32.mrf.mxu0 }
  0x9a   :  { %v126_v15 = vpack.c.bf16 %v118_v7, %v116_v6 }
  0xa1   :  { %v121_v8 = vpop.f32.mrf.mxu0 }
  0xa9   :  { %v123_v11 = vpop.f32.mrf.mxu0 }
  0xaa   :  { %v127_v13 = vpack.c.bf16 %v123_v11, %v121_v8  ;;  %v974_v11 = vld [vmem:[%s1357_s4 + $0x38] sm:$0xff] }
  0xab   :  { %469 = vmatpush.bf16.msrb.mxu0 %v974_v11 }
  0xac   :  { %155 = vmatpush.bf16.msra.mxu1 %v127_v13  ;;  %v973_v13 = vld [vmem:[%s1357_s4 + $0x30] sm:$0xff] }
  0xaf   :  { %470 = vmatpush.bf16.msrb.mxu0 %v973_v13 }
  0xb0   :  { %156 = vmatpush.bf16.msra.mxu1 %v126_v15 }
  0xb3   :  { %785 = vmatmul.msk.bf16.vlgmr.msra.gmra.mxu1 %vm142_vm1, %v1151_v16  ;;  %471 = vmatpush.bf16.msrb.mxu0 %v972_v18 }
  0xb4   :  { %354 = vmatpush.bf16.msrb.mxu1 %v966_v43 }
  0xb7   :  { %472 = vmatpush.bf16.msrb.mxu0 %v971_v21 }
  0xb8   :  { %355 = vmatpush.bf16.msrb.mxu1 %v965_v44 }
  0xbc   :  { %356 = vmatpush.bf16.msrb.mxu1 %v964_v46  ;;  %v875_v46 = vld [vmem:[%s1359_s6 + $0x50] sm:$0xff] }
  0xc0   :  { %357 = vmatpush.bf16.msrb.mxu1 %v963_v48 }
  0xc3   :  { %786 = vmatmul.msk.bf16.gmra.mxu1 %vm142_vm1, %v1158_v17 }
  0xc4   :  { %358 = vmatpush.bf16.msrb.mxu1 %v962_v50 }
  0xc8   :  { %359 = vmatpush.bf16.msrb.mxu1 %v961_v51 }
  0xcc   :  { %360 = vmatpush.bf16.msrb.mxu1 %v960_v52 }
  0xd0   :  { %361 = vmatpush.bf16.msrb.mxu1 %v959_v53 }
  0xd4   :  { %554 = vmatpush.bf16.msra.mxu1 %v982_v12 }
  0xd8   :  { %555 = vmatpush.bf16.msra.mxu1 %v981_v14 }
  0xdc   :  { %556 = vmatpush.bf16.msra.mxu1 %v980_v19 }
 0x130   :  { %v158_v22 = vpop.f32.mrf.mxu1 }
 0x131   :  { %v159_v25 = vadd.f32 %v158_v22, %v128_v23  ;;  %v979_v23 = vld [vmem:[%s1358_s5 + $0x20] sm:$0xff] }
 0x132   :  { %557 = vmatpush.bf16.msra.mxu1 %v979_v23  ;;  %986 = vmatpush.bf16.msrb.mxu2 %v979_v23 }
 0x133   :  { %v168_v28 = vmax.f32 %v159_v25, 0.0  ;;  %v970_v25 = vld [vmem:[%s1357_s4 + $0x18] sm:$0xff] }
 0x134   :  { %473 = vmatpush.bf16.msrb.mxu0 %v970_v25 }
 0x138   :  { %v160_v26 = vpop.f32.mrf.mxu1 }
 0x139   :  { %v161_v27 = vadd.f32 %v160_v26, %v129_v24  ;;  %v978_v24 = vld [vmem:[%s1358_s5 + $0x18] sm:$0xff]  ;;  %v976_v26 = vld [vmem:[%s1358_s5 + $0x8] sm:$0xff] }
 0x13a   :  { %558 = vmatpush.bf16.msra.mxu1 %v978_v24  ;;  %987 = vmatpush.bf16.msrb.mxu2 %v978_v24 }
 0x13b   :  { %v169_v29 = vmax.f32 %v161_v27, 0.0  ;;  %v968_v27 = vld [vmem:[%s1357_s4 + $0x8] sm:$0xff] }
 0x13d   :  { %v172_v30 = vpack.c.bf16 %v169_v29, %v168_v28  ;;  %v975_v28 = vld [vmem:[%s1358_s5] sm:$0xff] }
 0x13e   :  { %v967_v29 = vld [vmem:[%s1357_s4] sm:$0xff] }
 0x13f   :  { %246 = vmatmul.bf16.vlgmr.msra.gmra.mxu2 %v172_v30  ;;  %v585_v30 = vld [vmem:[%s1362_s9] sm:$0xff] }
 0x140   :  { %v163_v31 = vpop.f32.mrf.mxu1  ;;  %vm594_vm2 = vcmp.gt.f32.partialorder %v585_v30, 0.0 }
 0x141   :  { %v164_v34 = vadd.f32 %v163_v31, %v130_v32  ;;  %v1284_v31 = vld [vmem:[%s1361_s8] sm:$0xff]  ;;  %s1057_s8 = smov 112  }
 0x143   :  { %v170_v37 = vmax.f32 %v164_v34, 0.0 }
 0x148   :  { %v165_v35 = vpop.f32.mrf.mxu1 }
 0x149   :  { %v166_v36 = vadd.f32 %v165_v35, %v131_v33  ;;  %v1055_v33 = vmov 0   ;;  %v873_v35 = vld [vmem:[%s1359_s6 + $0x40] sm:$0xff] }
 0x14a   :  { %1014 = vset.pattern.permute.xlu1 %v1055_v33  ;;  %v601_v34 = vsel %vm594_vm2, 1, %v1055_v33  ;;  %1013 = vset.pattern.permute.xlu0 %v1055_v33 }
 0x14b   :  { %v171_v38 = vmax.f32 %v166_v36, 0.0  ;;  %603 = vperm.xlu1 %1014, %v601_v34   ;;  %v874_v36 = vld [vmem:[%s1359_s6 + $0x48] sm:$0xff] }
 0x14d   :  { %v173_v39 = vpack.c.bf16 %v171_v38, %v170_v37  ;;  %v1294_v37 = vld [vmem:[#allocation2] ss:$0 sm:$0xff] }
 0x14f   :  { %251 = vmatmul.bf16.gmra.mxu2 %v173_v39 }
 0x153   :  { %580 = vrot.lane.b32.xlu1 %v1294_v37, %s1057_s8 }
 0x1c2   :  { %v247_v40 = vpop.f32.mrf.mxu2 }
 0x1ca   :  { %v249_v41 = vpop.f32.mrf.mxu2 }
 0x1cb   :  { %v257_v49 = vpack.c.bf16 %v249_v41, %v247_v40 }
 0x1d2   :  { %v252_v42 = vpop.f32.mrf.mxu2 }
 0x1da   :  { %v254_v45 = vpop.f32.mrf.mxu2 }
 0x1db   :  { %v258_v47 = vpack.c.bf16 %v254_v45, %v252_v42 }
 0x1dd   :  { %270 = vmatpush.bf16.msra.mxu3 %v258_v47  ;;  %v876_v47 = vld [vmem:[%s1359_s6 + $0x58] sm:$0xff]  ;;  %s1058_s6 = smov 116  }
 0x1e1   :  { %271 = vmatpush.bf16.msra.mxu3 %v257_v49 }
 0x1e4   :  { %823 = vmatmul.msk.bf16.vlgmr.msra.gmra.mxu3 %vm142_vm1, %v1151_v16 }
 0x1f4   :  { %824 = vmatmul.msk.bf16.gmra.mxu3 %vm142_vm1, %v1158_v17 }
 0x267   :  { %v273_v54 = vpop.f32.mrf.mxu3 }
 0x268   :  { %v274_v57 = vadd.f32 %v819_v55, %v273_v54 }
 0x26a   :  { %v283_v60 = vmax.f32 %v274_v57, 0.0 }
 0x26f   :  { %v275_v58 = vpop.f32.mrf.mxu3 }
 0x270   :  { %v276_v59 = vadd.f32 %v820_v56, %v275_v58 }
 0x272   :  { %v284_v61 = vmax.f32 %v276_v59, 0.0 }
 0x274   :  { %v287_v62 = vpack.c.bf16 %v284_v61, %v283_v60 }
 0x276   :  { %362 = vmatmul.bf16.vlgmr.msrb.gmra.mxu1 %v287_v62 }
 0x277   :  { %v278_v63 = vpop.f32.mrf.mxu3 }
 0x278   :  { %v279_v2 = vadd.f32 %v821_v0, %v278_v63 }
 0x27a   :  { %v285_v5 = vmax.f32 %v279_v2, 0.0 }
 0x27f   :  { %v280_v3 = vpop.f32.mrf.mxu3 }
 0x280   :  { %v281_v4 = vadd.f32 %v822_v1, %v280_v3 }
 0x282   :  { %v286_v6 = vmax.f32 %v281_v4, 0.0  ;;  %v1316_v4 = vpop.permute.xlu1 %603 }
 0x283   :  { %vm605_vm3 = vcmp.eq.s32.totalorder %v1316_v4, 1 }
 0x284   :  { %v288_v7 = vpack.c.bf16 %v286_v6, %v285_v5 }
 0x286   :  { %367 = vmatmul.bf16.gmra.mxu1 %v288_v7 }
 0x2f3   :  { %v363_v8 = vpop.f32.mrf.mxu1 }
 0x2fb   :  { %v365_v9 = vpop.f32.mrf.mxu1 }
 0x2fc   :  { %v373_v22 = vpack.c.bf16 %v365_v9, %v363_v8 }
 0x303   :  { %v368_v10 = vpop.f32.mrf.mxu1 }
 0x30b   :  { %v370_v15 = vpop.f32.mrf.mxu1 }
 0x30c   :  { %v374_v20 = vpack.c.bf16 %v370_v15, %v368_v10  ;;  %v581_v10 = vpop.permute.xlu1 %580 }
 0x30e   :  { %386 = vmatpush.bf16.msrb.mxu3 %v374_v20 }
 0x312   :  { %387 = vmatpush.bf16.msrb.mxu3 %v373_v22 }
 0x315   :  { %877 = vmatmul.msk.bf16.vlgmr.msrb.gmra.mxu3 %vm142_vm1, %v1151_v16  ;;  %v977_v16 = vld [vmem:[%s1358_s5 + $0x10] sm:$0xff]  ;;  %s1056_s5 = smov 12  }
 0x316   :  { %559 = vmatpush.bf16.msra.mxu1 %v977_v16  ;;  %988 = vmatpush.bf16.msrb.mxu2 %v977_v16 }
 0x317   :  { %587 = vrot.lane.b32.xlu0 %v1284_v31, %s1056_s5 }
 0x31a   :  { %560 = vmatpush.bf16.msra.mxu1 %v976_v26  ;;  %989 = vmatpush.bf16.msrb.mxu2 %v976_v26 }
 0x31e   :  { %561 = vmatpush.bf16.msra.mxu1 %v975_v28  ;;  %990 = vmatpush.bf16.msrb.mxu2 %v975_v28 }
 0x31f   :  { %597 = vperm.xlu0 %1013, %v585_v30  }
 0x325   :  { %878 = vmatmul.msk.bf16.gmra.mxu3 %vm142_vm1, %v1158_v17  ;;  %v969_v17 = vld [vmem:[%s1357_s4 + $0x10] sm:$0xff] }
 0x326   :  { %474 = vmatpush.bf16.msrb.mxu0 %v969_v17 }
 0x32a   :  { %475 = vmatpush.bf16.msrb.mxu0 %v968_v27 }
 0x32e   :  { %476 = vmatpush.bf16.msrb.mxu0 %v967_v29 }
 0x389   :  { %v1307_v61 = vpop.permute.xlu0 %587 }
 0x391   :  { %v1314_v3 = vpop.permute.xlu0 %597 }
 0x398   :  { %v389_v32 = vpop.f32.mrf.mxu3 }
 0x399   :  { %v390_v38 = vadd.f32 %v873_v35, %v389_v32 }
 0x39b   :  { %v399_v41 = vmax.f32 %v390_v38, 0.0 }
 0x3a0   :  { %v391_v39 = vpop.f32.mrf.mxu3 }
 0x3a1   :  { %v392_v40 = vadd.f32 %v874_v36, %v391_v39 }
 0x3a3   :  { %v400_v42 = vmax.f32 %v392_v40, 0.0  ;;  %v488_v43 = vpack.c.bf16 %v392_v40, %v390_v38 }
 0x3a5   :  { %v403_v44 = vpack.c.bf16 %v400_v42, %v399_v41  ;;  %562 = vmatmul.bf16.vlgmr.msra.gmra.mxu1 %v488_v43 }
 0x3a7   :  { %477 = vmatmul.bf16.vlgmr.msrb.gmra.mxu0 %v403_v44 }
 0x3a8   :  { %v394_v45 = vpop.f32.mrf.mxu3 }
 0x3a9   :  { %v395_v48 = vadd.f32 %v875_v46, %v394_v45 }
 0x3ab   :  { %v401_v51 = vmax.f32 %v395_v48, 0.0 }
 0x3b0   :  { %v396_v49 = vpop.f32.mrf.mxu3 }
 0x3b1   :  { %v397_v50 = vadd.f32 %v876_v47, %v396_v49 }
 0x3b3   :  { %v402_v52 = vmax.f32 %v397_v50, 0.0  ;;  %v489_v53 = vpack.c.bf16 %v397_v50, %v395_v48 }
 0x3b5   :  { %566 = vmatmul.bf16.vlgmr.msrb.gmra.mxu2 %v489_v53  ;;  %v404_v54 = vpack.c.bf16 %v402_v52, %v401_v51 }
 0x3b7   :  { %482 = vmatmul.bf16.gmra.mxu0 %v404_v54 }
 0x422   :  { %v563_v55 = vpop.f32.mrf.mxu1 }
 0x424   :  { %v1303_v56 = vpop.f32.mrf.mxu0 }
 0x42a   :  { %v564_v8 = vpop.f32.mrf.mxu1 }
 0x42c   :  { %v480_v57 = vpop.f32.mrf.mxu0 }
 0x42d   :  { %v576_v19 = vadd.f32 %v1294_v37, %v480_v57 }
 0x434   :  { %v1305_v58 = vpop.f32.mrf.mxu0 }
 0x438   :  { %v567_v59 = vpop.f32.mrf.mxu2 }
 0x439   :  { %v579_v9 = vadd.f32 %v567_v59, %v564_v8 }
 0x43b   :  { %v583_v11 = vadd.f32 %v581_v10, %v579_v9 }
 0x43c   :  { %v485_v60 = vpop.f32.mrf.mxu0 }
 0x43d   :  { %v1310_v62 = vadd.f32 %v1294_v37, %v485_v60  ;;  %v607_v12 = vmul.f32 %v1284_v31, %v583_v11  ;;  %v575_v60 = vadd.f32 %v1294_v37, %v1303_v56 }
 0x43f   :  { %v590_v63 = vmul.f32 %v1307_v61, %v1310_v62  ;;  %vm608_vm5 = vcmp.ge.f32.partialorder %v607_v12, 0.0 }
 0x440   :  { %v569_v0 = vpop.f32.mrf.mxu2 }
 0x441   :  { %v591_v1 = vsub.f32 0.0, %v590_v63 }
 0x443   :  { %v592_v2 = vmul.f32 1.442695, %v591_v1 }
 0x445   :  { %1016 = vpow2.f32 %v592_v2 }
 0x44b   :  { %v1017_v5 = vpop.eup %1016 }
 0x44c   :  { %v600_v6 = vmul.f32 %v1017_v5, %v1314_v3 }
 0x44e   :  { %v606_v7 = vsel %vm605_vm3, %v600_v6, 0.0 }
 0x44f   :  { %610 = vrot.lane.b32.xlu2 %v606_v7, %s1058_s6 }
 0x4a9   :  { %v611_v13 = vpop.permute.xlu2 %610 }
 0x4aa   :  { %v625_v14 = vsel %vm614_vm4, %v611_v13, 0.0  ;;  %v613_v15 = vsel %vm608_vm5, %v611_v13, 0.0 }
 0x4ab   :  { %626 = vadd.xlane.f32.xlu1 %v625_v14  ;;  %v615_v18 = vsel %vm614_vm4, %v613_v15, 0.0 }
 0x4ac   :  { %616 = vadd.xlane.f32.xlu2 %v615_v18 }
 0x4c4   :  { %729 = vrot.lane.b32.xlu1 %v576_v19, %s1059_s25 }
 0x51e   :  { %v627_v20 = vpop.xlane.xlu1 %626 }
 0x51f   :  { %v628_v21 = vrot.slane %v627_v20, 4  ;;  %v617_v22 = vpop.xlane.xlu2 %616 }
 0x520   :  { %v618_v23 = vrot.slane %v617_v22, 4 }
 0x521   :  { %v629_v24 = vadd.f32 %v628_v21, %v627_v20 }
 0x522   :  { %v619_v25 = vadd.f32 %v618_v23, %v617_v22 }
 0x523   :  { %v630_v16 = vrot.slane %v629_v24, 2 }
 0x524   :  { %v620_v17 = vrot.slane %v619_v25, 2 }
 0x525   :  { %v631_v26 = vadd.f32 %v630_v16, %v629_v24 }
 0x526   :  { %v621_v27 = vadd.f32 %v620_v17, %v619_v25 }
 0x527   :  { %v632_v28 = vrot.slane %v631_v26, 1 }
 0x528   :  { %v622_v29 = vrot.slane %v621_v27, 1 }
 0x529   :  { %v633_v30 = vadd.f32 %v632_v28, %v631_v26 }
 0x52a   :  { %v623_v32 = vadd.f32 %v622_v29, %v621_v27 }
 0x52c   :  { %991 = vpush %v623_v32 }
 0x52d   :  { %993 = vpush %v633_v30  ;;  %v577_v30 = vadd.f32 %v1294_v37, %v1305_v58 }
 0x55d   :  { %s992_s26 = spop %991 }
 0x55e   :  { %s994_s27 = spop %993 }
 0x55f   :  { %s635_s28 = ssub.f32 %s994_s27, %s992_s26 }
 0x561   :  { %v636_v33 = vstv %s635_s28 }
 0x562   :  { %1018 = vrcp.f32 %v636_v33  ;;  %v648_v38 = vand.u32 2147483648, %v636_v33  ;;  %v646_v40 = vand.u32 2147483647, %v636_v33  ;;  %vm642_vm7 = vweird.f32 %v636_v33 }
 0x564   :  { %v649_v42 = vor.u32 1.1754944e-38, %v648_v38  ;;  %vm647_vm9 = vcmp.eq.f32.partialorder %v646_v40, 8.507059e+37 }
 0x568   :  { %v1019_v34 = vpop.eup %1018 }
 0x569   :  { %v638_v35 = vmul.f32 %v1019_v34, %v636_v33  ;;  %vm643_vm6 = vweird.f32 %v1019_v34 }
 0x56a   :  { %vm644_vm8 = vmor %vm642_vm7, %vm643_vm6 }
 0x56b   :  { %v639_v36 = vsub.f32 1.0, %v638_v35  ;;  %v730_v35 = vpop.permute.xlu1 %729 }
 0x56d   :  { %v640_v39 = vmul.f32 %v1019_v34, %v639_v36 }
 0x56f   :  { %v641_v41 = vadd.f32 %v1019_v34, %v640_v39 }
 0x571   :  { %v645_v43 = vsel %vm644_vm8, %v1019_v34, %v641_v41 }
 0x572   :  { %v650_v44 = vsel %vm647_vm9, %v649_v42, %v645_v43 }
 0x573   :  { %995 = vpush %v650_v44 }
 0x5a4   :  { %s996_s29 = spop %995 }
 0x5a5   :  { %s652_s3 = smul.f32 %s996_s29, %s992_s26 }
 0x5a7   :  { %v653_v45 = vstv %s652_s3 }
 0x5a8   :  { %1020 = vlog2.f32 %v653_v45 }
 0x5ae   :  { %v1021_v46 = vpop.eup %1020 }
 0x5af   :  { %v655_v47 = vmul.f32 0.6931472, %v1021_v46 }
 0x5b1   :  { %997 = vpush %v655_v47 }
 0x5e2   :  { %s998_s30 = spop %997 }
 0x5e3   :  { %s657_s2 = smul.f32 0.5, %s998_s30 }
 0x5e5   :  { %v658_v48 = vstv %s657_s2 }
 0x5e6   :  { %v659_v49 = vmul.f32 %v658_v48, %v583_v11 }
 0x5e8   :  { %661 = vrot.lane.b32.xlu0 %v659_v49, %s1056_s5 }
 0x65a   :  { %v662_v50 = vpop.permute.xlu0 %661 }
 0x65b   :  { %v1330_v51 = vadd.f32 %v662_v50, %v1310_v62  ;;  %v671_v62 = vmul.f32 %v1284_v31, %v575_v60 }
 0x65d   :  { %v665_v52 = vmul.f32 %v1330_v51, %v1307_v61  ;;  %vm672_vm10 = vcmp.ge.f32.partialorder %v671_v62, 0.0 }
 0x65f   :  { %v666_v53 = vsub.f32 0.0, %v665_v52 }
 0x661   :  { %v667_v54 = vmul.f32 1.442695, %v666_v53 }
 0x663   :  { %1022 = vpow2.f32 %v667_v54 }
 0x669   :  { %v1023_v55 = vpop.eup %1022 }
 0x66a   :  { %v669_v57 = vmul.f32 %v1023_v55, %v1314_v3 }
 0x66c   :  { %v670_v59 = vsel %vm605_vm3, %v669_v57, 0.0 }
 0x66d   :  { %674 = vrot.lane.b32.xlu0 %v670_v59, %s1058_s6 }
 0x6df   :  { %v675_v63 = vpop.permute.xlu0 %674 }
 0x6e0   :  { %v688_v61 = vsel %vm614_vm4, %v675_v63, 0.0  ;;  %v677_v0 = vsel %vm672_vm10, %v675_v63, 0.0 }
 0x6e1   :  { %689 = vadd.xlane.f32.xlu2 %v688_v61  ;;  %v678_v1 = vsel %vm614_vm4, %v677_v0, 0.0 }
 0x6e2   :  { %679 = vadd.xlane.f32.xlu0 %v678_v1 }
 0x754   :  { %v690_v2 = vpop.xlane.xlu2 %689 }
 0x755   :  { %v691_v3 = vrot.slane %v690_v2, 4  ;;  %v680_v4 = vpop.xlane.xlu0 %679 }
 0x756   :  { %v681_v5 = vrot.slane %v680_v4, 4 }
 0x757   :  { %v692_v6 = vadd.f32 %v691_v3, %v690_v2 }
 0x758   :  { %v682_v7 = vadd.f32 %v681_v5, %v680_v4 }
 0x759   :  { %v693_v8 = vrot.slane %v692_v6, 2 }
 0x75a   :  { %v683_v9 = vrot.slane %v682_v7, 2 }
 0x75b   :  { %v694_v56 = vadd.f32 %v693_v8, %v692_v6 }
 0x75c   :  { %v684_v10 = vadd.f32 %v683_v9, %v682_v7 }
 0x75d   :  { %v695_v31 = vrot.slane %v694_v56, 1 }
 0x75e   :  { %v685_v11 = vrot.slane %v684_v10, 1 }
 0x75f   :  { %v696_v12 = vadd.f32 %v695_v31, %v694_v56 }
 0x760   :  { %v686_v13 = vadd.f32 %v685_v11, %v684_v10 }
 0x762   :  { %999 = vpush %v686_v13 }
 0x763   :  { %1001 = vpush %v696_v12 }
 0x793   :  { %s1000_s11 = spop %999 }
 0x794   :  { %s1002_s12 = spop %1001 }
 0x795   :  { %s698_s13 = ssub.f32 %s1002_s12, %s1000_s11 }
 0x797   :  { %v699_v14 = vstv %s698_s13 }
 0x798   :  { %1024 = vrcp.f32 %v699_v14  ;;  %v711_v20 = vand.u32 2147483648, %v699_v14  ;;  %v709_v22 = vand.u32 2147483647, %v699_v14  ;;  %vm705_vm12 = vweird.f32 %v699_v14 }
 0x79a   :  { %v712_v24 = vor.u32 1.1754944e-38, %v711_v20  ;;  %vm710_vm14 = vcmp.eq.f32.partialorder %v709_v22, 8.507059e+37 }
 0x79e   :  { %v1025_v15 = vpop.eup %1024 }
 0x79f   :  { %v701_v18 = vmul.f32 %v1025_v15, %v699_v14  ;;  %vm706_vm11 = vweird.f32 %v1025_v15 }
 0x7a0   :  { %vm707_vm13 = vmor %vm705_vm12, %vm706_vm11 }
 0x7a1   :  { %v702_v19 = vsub.f32 1.0, %v701_v18 }
 0x7a3   :  { %v703_v21 = vmul.f32 %v1025_v15, %v702_v19 }
 0x7a5   :  { %v704_v23 = vadd.f32 %v1025_v15, %v703_v21 }
 0x7a7   :  { %v708_v25 = vsel %vm707_vm13, %v1025_v15, %v704_v23 }
 0x7a8   :  { %v713_v16 = vsel %vm710_vm14, %v712_v24, %v708_v25 }
 0x7a9   :  { %1003 = vpush %v713_v16 }
 0x7da   :  { %s1004_s0 = spop %1003 }
 0x7db   :  { %s715_s14 = smul.f32 %s1004_s0, %s1000_s11 }
 0x7dd   :  { %v716_v17 = vstv %s715_s14 }
 0x7de   :  { %1026 = vlog2.f32 %v716_v17 }
 0x7e4   :  { %v1027_v26 = vpop.eup %1026 }
 0x7e5   :  { %v718_v27 = vmul.f32 0.6931472, %v1027_v26 }
 0x7e7   :  { %1005 = vpush %v718_v27 }
 0x818   :  { %s1006_s15 = spop %1005 }
 0x819   :  { %s720_s16 = smul.f32 0.5, %s1006_s15 }
 0x81b   :  { %v721_v28 = vstv %s720_s16 }
 0x81c   :  { %v722_v29 = vmul.f32 %v721_v28, %v575_v60 }
 0x81e   :  { %724 = vrot.lane.b32.xlu2 %v722_v29, %s1056_s5 }
 0x826   :  { %733 = vrot.lane.b32.xlu2 %v577_v30, %s1059_s25 }
 0x878   :  { %v725_v32 = vpop.permute.xlu2 %724 }
 0x879   :  { %v727_v33 = vadd.f32 %v725_v32, %v1330_v51 }
 0x87b   :  { %737 = vrot.lane.b32.xlu0 %v727_v33, %s1059_s25 }
 0x880   :  { %v734_v34 = vpop.permute.xlu2 %733 }
 0x881   :  { %v740_v36 = vsel %vm614_vm4, %v730_v35, %v734_v34 }
 0x8ed   :  { %v738_v38 = vpop.permute.xlu0 %737 }
 0x8ee   :  { %v742_v39 = vsel %vm741_vm15, %v740_v36, %v738_v38 }
 0x8ef   :  { %v744_v40 = vsel %vm743_vm0, %v742_v39, 0.0 }
 0x8f0   :  { %745 = vst [vmem:[%s1363_s10] sm:$0xff] %v744_v40 }
 0x8f1   :  { %750 = vsyncpa [#allocation3], 1 }

</bundles_post_ra>
